<compile_context>
chip_gen: v6e
topology: v6e:2x2x1
jax: 0.10.0
libtpu: 0.0.40
codegen_flags: <defaults>
</compile_context>

<pallas_src>
import jax
import jax.numpy as jnp
from jax.experimental import pallas as pl
from jax.experimental.pallas import tpu as pltpu

BN_EPS = 1e-5
LANE = 128


# ---------------------------------------------------------------------------
# Kernels
# ---------------------------------------------------------------------------
def _stats_kernel(p_ref, w_ref, st_ref):
    # p: (TM, K) bf16, w: (K, Cp) bf16, st: (1, 8, Cp) f32
    y = jnp.dot(p_ref[...], w_ref[...], preferred_element_type=jnp.float32)  # (TM, Cp) f32
    s = jnp.sum(y, axis=0, keepdims=True)        # (1, Cp)  per-channel partial sum
    sq = jnp.sum(y * y, axis=0, keepdims=True)   # (1, Cp)  per-channel partial sum of squares
    pad = jnp.zeros((6, y.shape[1]), jnp.float32)
    st_ref[...] = jnp.concatenate([s, sq, pad], axis=0)[None, :, :]


def _norm_kernel(p_ref, w_ref, scale_ref, shift_ref, o_ref):
    # p: (TM, K) bf16, w: (K, Cp) bf16, scale/shift: (1, Cp) f32, o: (TM, Cp) f32
    y = jnp.dot(p_ref[...], w_ref[...], preferred_element_type=jnp.float32)
    o_ref[...] = (y * scale_ref[...] + shift_ref[...]).astype(o_ref.dtype)


# ---------------------------------------------------------------------------
# Wrapper
# ---------------------------------------------------------------------------
def _im2col_nhwc(x_nhwc, KH, KW):
    # x: (N, H, W, C) -> patches (N*OH*OW, KH*KW*C); K index = (kh*KW + kw)*C + c
    N, H, W, C = x_nhwc.shape
    OH, OW = H - KH + 1, W - KW + 1
    cols = [x_nhwc[:, kh:kh + OH, kw:kw + OW, :] for kh in range(KH) for kw in range(KW)]
    p = jnp.concatenate(cols, axis=-1)                     # (N, OH, OW, KH*KW*C)
    return p.reshape(N * OH * OW, KH * KW * C), OH, OW


def conv2d_bn(x_nchw, weight, gamma, beta, *, tm=1024):
    """x: (N, Cin, H, W); weight: (Cout, Cin, KH, KW) [PyTorch OIHW]; gamma/beta: (Cout,).
    stride=1, padding=0, dilation=1, groups=1 (module defaults). Returns (N, Cout, OH, OW).

    tm = rows (output pixels) per grid tile; clamped to a multiple of 8 and to the
    problem size so tiny inputs don't over-pad. Default sized for <=64 MiB VMEM (v7x);
    on v6e/v5e tm can be raised to 2048+ for fewer grid-step overheads.
    """
    N, Cin, H, W = x_nchw.shape
    Cout, _, KH, KW = weight.shape
    OH, OW = H - KH + 1, W - KW + 1
    M = N * OH * OW
    K = Cin * KH * KW
    Cp = pl.cdiv(Cout, LANE) * LANE            # lane-dense output channel dim

    # Keep the row tile a multiple of 8 (sublane) and no larger than the padded problem.
    tm = max(8, (min(tm, pl.cdiv(M, 8) * 8) // 8) * 8)
    num_tiles = pl.cdiv(M, tm)
    M_pad = num_tiles * tm

    # --- wrapper-side data prep (bf16 into the MXU, f32 everywhere else) ---
    x_nhwc = jnp.transpose(x_nchw, (0, 2, 3, 1)).astype(jnp.bfloat16)
    patches, _, _ = _im2col_nhwc(x_nhwc, KH, KW)                       # (M, K) bf16
    patches = jnp.pad(patches, ((0, M_pad - M), (0, 0)))               # zero rows: no effect on stats

    # weight (Cout, Cin, KH, KW) -> (K, Cp) matching patches' (kh, kw, ci) K-order
    w2d = jnp.transpose(weight, (2, 3, 1, 0)).reshape(K, Cout).astype(jnp.bfloat16)
    w2d = jnp.pad(w2d, ((0, 0), (0, Cp - Cout)))

    # --- pass 1: per-tile partial BN statistics (parallel over M tiles) ---
    stats = pl.pallas_call(
        _stats_kernel,
        out_shape=jax.ShapeDtypeStruct((num_tiles, 8, Cp), jnp.float32),
        grid_spec=pltpu.PrefetchScalarGridSpec(
            num_scalar_prefetch=0,
            grid=(num_tiles,),
            in_specs=[
                pl.BlockSpec((tm, K), lambda i: (i, 0)),
                pl.BlockSpec((K, Cp), lambda i: (0, 0)),
            ],
            out_specs=pl.BlockSpec((1, 8, Cp), lambda i: (i, 0, 0)),
        ),
        compiler_params=pltpu.CompilerParams(dimension_semantics=("parallel",)),
        cost_estimate=pl.CostEstimate(
            flops=2 * M_pad * K * Cp,
            transcendentals=0,
            bytes_accessed=M_pad * K * 2 + K * Cp * 2 + num_tiles * 8 * Cp * 4),
    )(patches, w2d)

    # --- tiny JAX glue: fold partial sums into per-channel scale/shift (f32) ---
    col_sum = jnp.sum(stats[:, 0, :], axis=0)                 # (Cp,)
    col_sumsq = jnp.sum(stats[:, 1, :], axis=0)               # (Cp,)
    mean = col_sum / M                                        # divide by real M (zero-pad rows add 0)
    var = jnp.maximum(col_sumsq / M - mean * mean, 0.0)       # biased var (BN training mode)
    g = jnp.pad(gamma.astype(jnp.float32), (0, Cp - Cout))
    b = jnp.pad(beta.astype(jnp.float32), (0, Cp - Cout))
    scale_v = g * jax.lax.rsqrt(var + BN_EPS)                 # (Cp,)
    shift_v = b - mean * scale_v                              # (Cp,)
    scale = scale_v.reshape(1, Cp)
    shift = shift_v.reshape(1, Cp)

    # --- pass 2: recompute GEMM tile + fused y*scale + shift epilogue ---
    out = pl.pallas_call(
        _norm_kernel,
        out_shape=jax.ShapeDtypeStruct((M_pad, Cp), jnp.float32),
        grid_spec=pltpu.PrefetchScalarGridSpec(
            num_scalar_prefetch=0,
            grid=(num_tiles,),
            in_specs=[
                pl.BlockSpec((tm, K), lambda i: (i, 0)),
                pl.BlockSpec((K, Cp), lambda i: (0, 0)),
                pl.BlockSpec((1, Cp), lambda i: (0, 0)),
                pl.BlockSpec((1, Cp), lambda i: (0, 0)),
            ],
            out_specs=pl.BlockSpec((tm, Cp), lambda i: (i, 0)),
        ),
        compiler_params=pltpu.CompilerParams(dimension_semantics=("parallel",)),
        cost_estimate=pl.CostEstimate(
            flops=2 * M_pad * K * Cp + 2 * M_pad * Cp,
            transcendentals=0,
            bytes_accessed=M_pad * K * 2 + K * Cp * 2 + 2 * Cp * 4 + M_pad * Cp * 4),
    )(patches, w2d, scale, shift)

    out = out[:M, :Cout].reshape(N, OH, OW, Cout)
    # TODO(synk): return NHWC to the consumer to avoid this extra HBM transpose pass.
    return jnp.transpose(out, (0, 3, 1, 2))


# ---------------------------------------------------------------------------
# Reference
# ---------------------------------------------------------------------------
def reference_conv2d_bn(x_nchw, weight, gamma, beta):
    y = jax.lax.conv_general_dilated(
        x_nchw.astype(jnp.float32), weight.astype(jnp.float32),
        window_strides=(1, 1), padding="VALID",
        dimension_numbers=("NCHW", "OIHW", "NCHW"),
    )
    mean = jnp.mean(y, axis=(0, 2, 3), keepdims=True)
    var = jnp.mean((y - mean) ** 2, axis=(0, 2, 3), keepdims=True)
    g = gamma.reshape(1, -1, 1, 1)
    b = beta.reshape(1, -1, 1, 1)
    return (y - mean) * jax.lax.rsqrt(var + BN_EPS) * g + b


if __name__ == "__main__":
    key = jax.random.PRNGKey(0)
    k_x, k_w = jax.random.split(key)

    N, Cin, H, W = 2, 4, 16, 16
    Cout, KH, KW = 8, 3, 3

    x = jax.random.normal(k_x, (N, Cin, H, W), dtype=jnp.float32)
    # Conv weight (PyTorch OIHW layout), bias=False in the module.
    fan_in = Cin * KH * KW
    weight = jax.random.normal(k_w, (Cout, Cin, KH, KW), dtype=jnp.float32) / jnp.sqrt(fan_in)
    # BatchNorm params per module __init__: gamma = bn_weight_init = 1, beta = 0.
    gamma = jnp.ones((Cout,), dtype=jnp.float32)
    beta = jnp.zeros((Cout,), dtype=jnp.float32)

    # Single jit so the whole wrapper (im2col + two pallas_calls + glue) compiles once.
    conv2d_bn_jit = jax.jit(conv2d_bn, static_argnames=("tm",))

    # tm=128 so the tiny test actually exercises multiple grid tiles and the
    # cross-tile BN statistics reduction (M = 2*14*14 = 392 -> 4 tiles).
    out = conv2d_bn_jit(x, weight, gamma, beta, tm=128)
    jax.block_until_ready(out)
    assert out.shape == (N, Cout, H - KH + 1, W - KW + 1), out.shape

    # Tight check against a reference that sees the same bf16-quantized conv inputs
    # (isolates kernel/tiling/BN logic from the intentional bf16 input rounding).
    x_q = x.astype(jnp.bfloat16).astype(jnp.float32)
    w_q = weight.astype(jnp.bfloat16).astype(jnp.float32)
    ref_q = reference_conv2d_bn(x_q, w_q, gamma, beta)
    assert jnp.allclose(out, ref_q, atol=2e-3, rtol=2e-3), float(jnp.max(jnp.abs(out - ref_q)))

    # Loose end-to-end check against the full-f32 module semantics (bf16 matmul inputs
    # introduce ~1e-2 absolute error on N(0,1)-scale outputs).
    ref = reference_conv2d_bn(x, weight, gamma, beta)
    assert jnp.allclose(out, ref, atol=5e-2, rtol=5e-2), float(jnp.max(jnp.abs(out - ref)))

    print("KERNEL_OK")
</pallas_src>

<mosaic_0001>
module attributes {stable_mosaic.version = 11 : i64} {
  func.func @_norm_kernel(%arg0: i32, %arg1: memref<128x36xbf16, #tpu.memory_space<vmem>>, %arg2: memref<36x128xbf16, #tpu.memory_space<vmem>>, %arg3: memref<1x128xf32, #tpu.memory_space<vmem>>, %arg4: memref<1x128xf32, #tpu.memory_space<vmem>>, %arg5: memref<128x128xf32, #tpu.memory_space<vmem>>) attributes {dimension_semantics = [#tpu.dimension_semantics<parallel>], iteration_bounds = array<i64: 4>, scalar_prefetch = 0 : i64, scratch_operands = 0 : i64, tpu.core_type = #tpu.core_type<tc>, window_params = [{transform_indices = @transform_0, window_bounds = array<i64: 128, 36>}, {pipeline_mode = #tpu.pipeline_mode<synchronous>, transform_indices = @transform_1, window_bounds = array<i64: 36, 128>}, {pipeline_mode = #tpu.pipeline_mode<synchronous>, transform_indices = @transform_2, window_bounds = array<i64: 1, 128>}, {pipeline_mode = #tpu.pipeline_mode<synchronous>, transform_indices = @transform_3, window_bounds = array<i64: 1, 128>}, {transform_indices = @transform_4, window_bounds = array<i64: 128, 128>}]} {
    %c0 = arith.constant 0 : index
    %c0_0 = arith.constant 0 : index
    %0 = vector.load %arg1[%c0, %c0_0] : memref<128x36xbf16, #tpu.memory_space<vmem>>, vector<128x36xbf16>
    %c0_1 = arith.constant 0 : index
    %c0_2 = arith.constant 0 : index
    %1 = vector.load %arg2[%c0_1, %c0_2] : memref<36x128xbf16, #tpu.memory_space<vmem>>, vector<36x128xbf16>
    %cst = arith.constant dense<0.000000e+00> : vector<128x128xf32>
    %2 = tpu.matmul %0, %1, %cst {dimension_numbers = #tpu.dot_dimension_numbers<[1], [0], [0], [1], [0, 0, 1, 1], [], []>} : vector<128x36xbf16>, vector<36x128xbf16>, vector<128x128xf32> -> vector<128x128xf32>
    %c0_3 = arith.constant 0 : index
    %c0_4 = arith.constant 0 : index
    %3 = vector.load %arg3[%c0_3, %c0_4] : memref<1x128xf32, #tpu.memory_space<vmem>>, vector<1x128xf32>
    %4 = vector.broadcast %3 : vector<1x128xf32> to vector<128x128xf32>
    %5 = arith.mulf %2, %4 : vector<128x128xf32>
    %c0_5 = arith.constant 0 : index
    %c0_6 = arith.constant 0 : index
    %6 = vector.load %arg4[%c0_5, %c0_6] : memref<1x128xf32, #tpu.memory_space<vmem>>, vector<1x128xf32>
    %7 = vector.broadcast %6 : vector<1x128xf32> to vector<128x128xf32>
    %8 = arith.addf %5, %7 : vector<128x128xf32>
    %c0_7 = arith.constant 0 : index
    %c0_8 = arith.constant 0 : index
    %9 = vector.load %arg5[%c0_7, %c0_8] : memref<128x128xf32, #tpu.memory_space<vmem>>, vector<128x128xf32>
    tpu.vector_store %arg5[%c0_7, %c0_8], %8 {strides = array<i32>} : memref<128x128xf32, #tpu.memory_space<vmem>>, vector<128x128xf32>,
    return
  }
  func.func @transform_0(%arg0: i32) -> (i32, i32) {
    %c0_i32 = arith.constant 0 : i32
    %c0_i32_0 = arith.constant 0 : i32
    return %arg0, %c0_i32 : i32, i32
  }
  func.func @transform_1(%arg0: i32) -> (i32, i32) {
    %c0_i32 = arith.constant 0 : i32
    %c0_i32_0 = arith.constant 0 : i32
    %c0_i32_1 = arith.constant 0 : i32
    return %c0_i32, %c0_i32_0 : i32, i32
  }
  func.func @transform_2(%arg0: i32) -> (i32, i32) {
    %c0_i32 = arith.constant 0 : i32
    %c0_i32_0 = arith.constant 0 : i32
    %c0_i32_1 = arith.constant 0 : i32
    return %c0_i32, %c0_i32_0 : i32, i32
  }
  func.func @transform_3(%arg0: i32) -> (i32, i32) {
    %c0_i32 = arith.constant 0 : i32
    %c0_i32_0 = arith.constant 0 : i32
    %c0_i32_1 = arith.constant 0 : i32
    return %c0_i32, %c0_i32_0 : i32, i32
  }
  func.func @transform_4(%arg0: i32) -> (i32, i32) {
    %c0_i32 = arith.constant 0 : i32
    %c0_i32_0 = arith.constant 0 : i32
    return %arg0, %c0_i32 : i32, i32
  }
}

module attributes {stable_mosaic.version = 11 : i64} {
  func.func @_stats_kernel(%arg0: i32, %arg1: memref<128x36xbf16, #tpu.memory_space<vmem>>, %arg2: memref<36x128xbf16, #tpu.memory_space<vmem>>, %arg3: memref<1x8x128xf32, #tpu.memory_space<vmem>>) attributes {dimension_semantics = [#tpu.dimension_semantics<parallel>], iteration_bounds = array<i64: 4>, scalar_prefetch = 0 : i64, scratch_operands = 0 : i64, tpu.core_type = #tpu.core_type<tc>, window_params = [{transform_indices = @transform_0, window_bounds = array<i64: 128, 36>}, {pipeline_mode = #tpu.pipeline_mode<synchronous>, transform_indices = @transform_1, window_bounds = array<i64: 36, 128>}, {transform_indices = @transform_2, window_bounds = array<i64: 1, 8, 128>}]} {
    %c0 = arith.constant 0 : index
    %c0_0 = arith.constant 0 : index
    %0 = vector.load %arg1[%c0, %c0_0] : memref<128x36xbf16, #tpu.memory_space<vmem>>, vector<128x36xbf16>
    %c0_1 = arith.constant 0 : index
    %c0_2 = arith.constant 0 : index
    %1 = vector.load %arg2[%c0_1, %c0_2] : memref<36x128xbf16, #tpu.memory_space<vmem>>, vector<36x128xbf16>
    %cst = arith.constant dense<0.000000e+00> : vector<128x128xf32>
    %2 = tpu.matmul %0, %1, %cst {dimension_numbers = #tpu.dot_dimension_numbers<[1], [0], [0], [1], [0, 0, 1, 1], [], []>} : vector<128x36xbf16>, vector<36x128xbf16>, vector<128x128xf32> -> vector<128x128xf32>
    %cst_3 = arith.constant dense<0.000000e+00> : vector<128xf32>
    %3 = vector.multi_reduction <add>, %2, %cst_3 [0] : vector<128x128xf32> to vector<128xf32>
    %4 = vector.shape_cast %3 : vector<128xf32> to vector<1x128xf32>
    %5 = arith.mulf %2, %2 : vector<128x128xf32>
    %cst_4 = arith.constant dense<0.000000e+00> : vector<128xf32>
    %6 = vector.multi_reduction <add>, %5, %cst_4 [0] : vector<128x128xf32> to vector<128xf32>
    %7 = vector.shape_cast %6 : vector<128xf32> to vector<1x128xf32>
    %cst_5 = arith.constant 0.000000e+00 : f32
    %8 = vector.broadcast %cst_5 : f32 to vector<6x128xf32>
    %9 = tpu.concatenate %4, %7, %8 in 0 : vector<1x128xf32>, vector<1x128xf32>, vector<6x128xf32> -> vector<8x128xf32>
    %10 = vector.shape_cast %9 : vector<8x128xf32> to vector<1x8x128xf32>
    %c0_6 = arith.constant 0 : index
    %c0_7 = arith.constant 0 : index
    %c0_8 = arith.constant 0 : index
    %11 = vector.load %arg3[%c0_6, %c0_7, %c0_8] : memref<1x8x128xf32, #tpu.memory_space<vmem>>, vector<1x8x128xf32>
    tpu.vector_store %arg3[%c0_6, %c0_7, %c0_8], %10 {strides = array<i32>} : memref<1x8x128xf32, #tpu.memory_space<vmem>>, vector<1x8x128xf32>,
    return
  }
  func.func @transform_0(%arg0: i32) -> (i32, i32) {
    %c0_i32 = arith.constant 0 : i32
    %c0_i32_0 = arith.constant 0 : i32
    return %arg0, %c0_i32 : i32, i32
  }
  func.func @transform_1(%arg0: i32) -> (i32, i32) {
    %c0_i32 = arith.constant 0 : i32
    %c0_i32_0 = arith.constant 0 : i32
    %c0_i32_1 = arith.constant 0 : i32
    return %c0_i32, %c0_i32_0 : i32, i32
  }
  func.func @transform_2(%arg0: i32) -> (i32, i32, i32) {
    %c0_i32 = arith.constant 0 : i32
    %c0_i32_0 = arith.constant 0 : i32
    %c0_i32_1 = arith.constant 0 : i32
    return %arg0, %c0_i32, %c0_i32_0 : i32, i32, i32
  }
}

</mosaic_0001>

<bundles_post_ra>
// kernel: conv2d_bn.3
= control target key start
LH: loop header
LB: loop body
LE: loop exit
PB: predicated region body
PF: predicated region fallthrough
CT: control target
= control target key end

     0   :  { %s647_s15 = smov 0   ;;  %s709_s0 = inlined_call_operand.vmem [shape: bf16[512,36], index: 0, kind: input, shape index: {}]   ;;  %s710_s1 = inlined_call_operand.vmem [shape: bf16[36,128], index: 1, kind: input, shape index: {}]   ;;  %s711_s2 = inlined_call_operand.vmem [shape: f32[1,128], index: 2, kind: input, shape index: {}]   ;;  %s712_s3 = inlined_call_operand.vmem [shape: f32[1,128], index: 3, kind: input, shape index: {}]   ;;  %s713_s4 = inlined_call_operand.vmem [shape: f32[512,128], index: 4, kind: output, shape index: {}]  }
   0x1 LB: > { %s522_s16 = sadd.s32 4294967295, %s620_s15   ;;  %p526_p0 = scmp.ge.s32.totalorder %s620_s15, 1  ;;  %s620_s15 = sphi %s647_s15, %s14_s15  }
   0x2   : > { %p163_p1 = scmp.lt.s32.totalorder %s620_s15, 5 }
   0x4   : > { %p164_p2 = pnand %p526_p0, %p163_p1 }
   0x5   : > { %s527_s21 = sshll.u32 (!%p164_p2), %s522_s16, 4 }
   0x6   : > { %167 = sbr.rel (%p164_p2) target bundleno = 236 (0xec), region = 36  ;;  %p190_p3 = scmp.lt.s32.totalorder (!%p164_p2), %s527_s21, 63 }
   0xb   : > { %v603_v0 = vld [vmem:[%s710_s1 + $0x10] ss:$0 sps:$4 sm:$0x33]   ;;  %vm303_vm0 = vcmask 1041408   ;;  %v604_v1 = vld [vmem:[%s710_s1 + $0x8] sm:$0xff]   ;;  %v605_v3 = vld [vmem:[%s710_s1] sm:$0xff]  }
   0xc   : > { %593 = vmatprep.subr.msk.bf16.mxu0 %vm303_vm0, %v603_v0  ;;  %594 = vmatprep.subr.msk.bf16.mxu1 %vm303_vm0, %v603_v0  ;;  %v305_v2 = vsel %vm303_vm0, %v603_v0, 0  ;;  %s715_s21 = smov (!%p190_p3, %s527_s21), 63  ;;  %vm278_vm1 = vcmask 293888   ;;  %v550_v12 = vld [vmem:[%s711_s2] ss:$0 sm:$0xff] }
   0xd   : > { %566 = vmatpush3.bf16.msra.mxu0 %v305_v2  ;;  %590 = vmatpush3.bf16.msra.mxu1 %v305_v2  ;;  %s528_s24 = sshll.u32 %s715_s21, 2  ;;  %s530_s30 = sshll.u32 %s715_s21, 3  ;;  %v551_v14 = vld [vmem:[%s712_s3] ss:$0 sm:$0xff] }
   0xe   : > { %567 = vmatprep.subr.bf16.mxu0 %v604_v1  ;;  %588 = vmatprep.subr.bf16.mxu1 %v604_v1  ;;  %s193_s27 = scalar_lea.vmem %s709_s0, %s528_s24  ;;  %s688_s9 = scalar_lea.vmem %s713_s4, %s530_s30 }
   0xf   : > { %v606_v4 = vld [vmem:[%s193_s27] sm:$0xff]   ;;  %v608_v6 = vld [vmem:[%s193_s27 + $0x8] sm:$0xff]   ;;  %v610_v8 = vld [vmem:[%s193_s27 + $0x10] sm:$0xff]  }
  0x10   : > { %v607_v5 = vld [vmem:[%s193_s27 + $0x20] sm:$0xff]   ;;  %571 = vmatprep.mubr.msk.bf16.mxu0 %vm278_vm1, %v606_v4  ;;  %v609_v7 = vld [vmem:[%s193_s27 + $0x28] sm:$0xff]   ;;  %v611_v9 = vld [vmem:[%s193_s27 + $0x30] sm:$0xff]  }
  0x11   : > { %568 = vmatpush3.bf16.msra.mxu0 %v604_v1  ;;  %591 = vmatpush3.bf16.msra.mxu1 %v604_v1  ;;  %v612_v10 = vld [vmem:[%s193_s27 + $0x18] sm:$0xff]  }
  0x12   : > { %569 = vmatprep.subr.bf16.mxu0 %v605_v3  ;;  %589 = vmatprep.subr.bf16.mxu1 %v605_v3  ;;  %v613_v11 = vld [vmem:[%s193_s27 + $0x38] sm:$0xff]  }
  0x13   : > { %579 = vmatprep.mubr.msk.bf16.mxu1 %vm278_vm1, %v607_v5 }
  0x15   : > { %570 = vmatpush3.bf16.msra.mxu0 %v605_v3  ;;  %592 = vmatpush3.bf16.msra.mxu1 %v605_v3 }
  0x18   : > { %572 = vmatmul.mubr.msk.bf16.vlgmr.msra.gmra.mxu0 %vm278_vm1, %v608_v6  ;;  %580 = vmatmul.mubr.msk.bf16.vlgmr.msra.gmra.mxu1 %vm278_vm1, %v609_v7 }
  0x19   : > { %575 = vmatprep.mubr.msk.bf16.mxu0 %vm278_vm1, %v610_v8  ;;  %583 = vmatprep.mubr.msk.bf16.mxu1 %vm278_vm1, %v611_v9 }
  0x20   : > { %576 = vmatmul.mubr.msk.bf16.gmra.mxu0 %vm278_vm1, %v612_v10  ;;  %584 = vmatmul.mubr.msk.bf16.gmra.mxu1 %vm278_vm1, %v613_v11 }
  0xd8   : > { %v573_v13 = vpop.f32.mrf.mxu0  ;;  %v581_v15 = vpop.f32.mrf.mxu1 }
  0xd9   : > { %v413_v16 = vmul.f32 %v573_v13, %v550_v12  ;;  %v421_v17 = vmul.f32 %v581_v15, %v550_v12 }
  0xda   : > { %v341_v18 = vpop.f32.mrf.mxu0  ;;  %v373_v19 = vpop.f32.mrf.mxu1 }
  0xdb   : > { %v436_v20 = vadd.f32 %v551_v14, %v413_v16  ;;  %v444_v21 = vadd.f32 %v551_v14, %v421_v17  ;;  %v411_v22 = vmul.f32 %v550_v12, %v341_v18  ;;  %v419_v23 = vmul.f32 %v550_v12, %v373_v19 }
  0xdc   : > { %v574_v24 = vpop.f32.mrf.mxu0  ;;  %v582_v25 = vpop.f32.mrf.mxu1 }
  0xdd   : > { %452 = vst [vmem:[%s688_s9 + $0x10] sm:$0xff] %v436_v20  ;;  %460 = vst [vmem:[%s688_s9 + $0x50] sm:$0xff] %v444_v21  ;;  %v434_v26 = vadd.f32 %v551_v14, %v411_v22  ;;  %v442_v27 = vadd.f32 %v551_v14, %v419_v23  ;;  %v414_v28 = vmul.f32 %v574_v24, %v550_v12 }
  0xde   : > { %v422_v29 = vmul.f32 %v582_v25, %v550_v12  ;;  %v344_v30 = vpop.f32.mrf.mxu0  ;;  %v376_v31 = vpop.f32.mrf.mxu1 }
  0xdf   : > { %450 = vst [vmem:[%s688_s9] sm:$0xff] %v434_v26  ;;  %458 = vst [vmem:[%s688_s9 + $0x40] sm:$0xff] %v442_v27  ;;  %v437_v32 = vadd.f32 %v551_v14, %v414_v28  ;;  %v412_v34 = vmul.f32 %v550_v12, %v344_v30  ;;  %v420_v35 = vmul.f32 %v550_v12, %v376_v31 }
  0xe0   : > { %v445_v33 = vadd.f32 %v551_v14, %v422_v29  ;;  %v577_v36 = vpop.f32.mrf.mxu0  ;;  %v585_v37 = vpop.f32.mrf.mxu1 }
  0xe1   : > { %453 = vst [vmem:[%s688_s9 + $0x18] sm:$0xff] %v437_v32  ;;  %v435_v38 = vadd.f32 %v551_v14, %v412_v34  ;;  %v443_v39 = vadd.f32 %v551_v14, %v420_v35  ;;  %v417_v40 = vmul.f32 %v577_v36, %v550_v12  ;;  %v425_v41 = vmul.f32 %v585_v37, %v550_v12 }
  0xe2   : > { %461 = vst [vmem:[%s688_s9 + $0x58] sm:$0xff] %v445_v33  ;;  %v357_v42 = vpop.f32.mrf.mxu0  ;;  %v389_v43 = vpop.f32.mrf.mxu1 }
  0xe3   : > { %451 = vst [vmem:[%s688_s9 + $0x8] sm:$0xff] %v435_v38  ;;  %459 = vst [vmem:[%s688_s9 + $0x48] sm:$0xff] %v443_v39  ;;  %v440_v44 = vadd.f32 %v551_v14, %v417_v40  ;;  %v448_v45 = vadd.f32 %v551_v14, %v425_v41  ;;  %v415_v46 = vmul.f32 %v550_v12, %v357_v42 }
  0xe4   : > { %v423_v47 = vmul.f32 %v550_v12, %v389_v43  ;;  %v578_v48 = vpop.f32.mrf.mxu0  ;;  %v586_v49 = vpop.f32.mrf.mxu1 }
  0xe5   : > { %456 = vst [vmem:[%s688_s9 + $0x30] sm:$0xff] %v440_v44  ;;  %464 = vst [vmem:[%s688_s9 + $0x70] sm:$0xff] %v448_v45  ;;  %v438_v50 = vadd.f32 %v551_v14, %v415_v46  ;;  %v418_v52 = vmul.f32 %v578_v48, %v550_v12  ;;  %v426_v53 = vmul.f32 %v586_v49, %v550_v12 }
  0xe6   : > { %v446_v51 = vadd.f32 %v551_v14, %v423_v47  ;;  %v360_v54 = vpop.f32.mrf.mxu0  ;;  %v392_v55 = vpop.f32.mrf.mxu1 }
  0xe7   : > { %454 = vst [vmem:[%s688_s9 + $0x20] sm:$0xff] %v438_v50  ;;  %v441_v56 = vadd.f32 %v551_v14, %v418_v52  ;;  %v449_v57 = vadd.f32 %v551_v14, %v426_v53  ;;  %v416_v58 = vmul.f32 %v550_v12, %v360_v54  ;;  %v424_v59 = vmul.f32 %v550_v12, %v392_v55 }
  0xe8   : > { %462 = vst [vmem:[%s688_s9 + $0x60] sm:$0xff] %v446_v51 }
  0xe9   : > { %457 = vst [vmem:[%s688_s9 + $0x38] sm:$0xff] %v441_v56  ;;  %465 = vst [vmem:[%s688_s9 + $0x78] sm:$0xff] %v449_v57  ;;  %v439_v60 = vadd.f32 %v551_v14, %v416_v58  ;;  %v447_v61 = vadd.f32 %v551_v14, %v424_v59 }
  0xeb   : > { %455 = vst [vmem:[%s688_s9 + $0x28] sm:$0xff] %v439_v60  ;;  %463 = vst [vmem:[%s688_s9 + $0x68] sm:$0xff] %v447_v61 }
  0xec PF: > { %s14_s15 = sadd.s32 1, %s620_s15  }
  0xed   : > { %p11_p4 = scmp.ge.s32.totalorder %s14_s15, 6  }
  0xef   :  { %13 = sbr.rel (!%p11_p4) target bundleno = 1 (0x1), region = 66 }

// kernel: conv2d_bn.2
= control target key start
LH: loop header
LB: loop body
LE: loop exit
PB: predicated region body
PF: predicated region fallthrough
CT: control target
= control target key end

     0   :  { %s574_s9 = smov 0   ;;  %s617_s0 = inlined_call_operand.vmem [shape: bf16[512,36], index: 0, kind: input, shape index: {}]   ;;  %s618_s1 = inlined_call_operand.vmem [shape: bf16[36,128], index: 1, kind: input, shape index: {}]   ;;  %s619_s2 = inlined_call_operand.vmem [shape: f32[4,8,128], index: 2, kind: output, shape index: {}]  }
   0x1 LB: > { %s580_s10 = sadd.s32 4294967295, %s557_s9   ;;  %p466_p0 = scmp.ge.s32.totalorder %s557_s9, 1  ;;  %s557_s9 = sphi %s574_s9, %s12_s9  }
   0x2   : > { %p113_p1 = scmp.lt.s32.totalorder %s557_s9, 5 }
   0x4   : > { %p114_p2 = pnand %p466_p0, %p113_p1 }
   0x5   : > { %s467_s15 = sshll.u32 (!%p114_p2), %s580_s10, 4  ;;  %p140_p4 = scmp.lt.s32.totalorder (!%p114_p2), %s580_s10, 3 }
   0x6   : > { %117 = sbr.rel (%p114_p2) target bundleno = 270 (0x10e), region = 28  ;;  %p135_p3 = scmp.lt.s32.totalorder (!%p114_p2), %s467_s15, 63 }
   0xb   : > { %v540_v0 = vld [vmem:[%s618_s1 + $0x10] ss:$0 sps:$4 sm:$0x33]   ;;  %vm246_vm0 = vcmask 1041408   ;;  %v541_v1 = vld [vmem:[%s618_s1 + $0x8] sm:$0xff]   ;;  %v542_v3 = vld [vmem:[%s618_s1] sm:$0xff]  }
   0xc   : > { %530 = vmatprep.subr.msk.bf16.mxu0 %vm246_vm0, %v540_v0  ;;  %v248_v2 = vsel %vm246_vm0, %v540_v0, 0  ;;  %531 = vmatprep.subr.msk.bf16.mxu1 %vm246_vm0, %v540_v0  ;;  %s621_s15 = smov (!%p135_p3, %s467_s15), 63  ;;  %vm221_vm1 = vcmask 293888   ;;  %s623_s10 = smov (!%p140_p4, %s580_s10), 3  ;;  %vm405_vm2 = vcmask 1040384  }
   0xd   : > { %503 = vmatpush3.bf16.msra.mxu0 %v248_v2  ;;  %527 = vmatpush3.bf16.msra.mxu1 %v248_v2  ;;  %s468_s18 = sshll.u32 %s621_s15, 2  ;;  %s469_s22 = sshll.u32 %s623_s10, 3 }
   0xe   : > { %504 = vmatprep.subr.bf16.mxu0 %v541_v1  ;;  %525 = vmatprep.subr.bf16.mxu1 %v541_v1  ;;  %s138_s21 = scalar_lea.vmem %s617_s0, %s468_s18  ;;  %s143_s25 = scalar_lea.vmem %s619_s2, %s469_s22 }
   0xf   : > { %v543_v4 = vld [vmem:[%s138_s21] sm:$0xff]   ;;  %v544_v5 = vld [vmem:[%s138_s21 + $0x8] sm:$0xff]   ;;  %v545_v6 = vld [vmem:[%s138_s21 + $0x10] sm:$0xff]  }
  0x10   : > { %508 = vmatprep.mubr.msk.bf16.mxu0 %vm221_vm1, %v543_v4  ;;  %v547_v7 = vld [vmem:[%s138_s21 + $0x20] sm:$0xff]   ;;  %v548_v8 = vld [vmem:[%s138_s21 + $0x28] sm:$0xff]   ;;  %v549_v9 = vld [vmem:[%s138_s21 + $0x30] sm:$0xff]  }
  0x11   : > { %505 = vmatpush3.bf16.msra.mxu0 %v541_v1  ;;  %528 = vmatpush3.bf16.msra.mxu1 %v541_v1  ;;  %v546_v10 = vld [vmem:[%s138_s21 + $0x18] sm:$0xff]  }
  0x12   : > { %506 = vmatprep.subr.bf16.mxu0 %v542_v3  ;;  %526 = vmatprep.subr.bf16.mxu1 %v542_v3  ;;  %v550_v11 = vld [vmem:[%s138_s21 + $0x38] sm:$0xff]  }
  0x13   : > { %516 = vmatprep.mubr.msk.bf16.mxu1 %vm221_vm1, %v547_v7 }
  0x15   : > { %507 = vmatpush3.bf16.msra.mxu0 %v542_v3  ;;  %529 = vmatpush3.bf16.msra.mxu1 %v542_v3 }
  0x18   : > { %509 = vmatmul.mubr.msk.bf16.vlgmr.msra.gmra.mxu0 %vm221_vm1, %v544_v5  ;;  %517 = vmatmul.mubr.msk.bf16.vlgmr.msra.gmra.mxu1 %vm221_vm1, %v548_v8 }
  0x19   : > { %512 = vmatprep.mubr.msk.bf16.mxu0 %vm221_vm1, %v545_v6  ;;  %520 = vmatprep.mubr.msk.bf16.mxu1 %vm221_vm1, %v549_v9 }
  0x20   : > { %513 = vmatmul.mubr.msk.bf16.gmra.mxu0 %vm221_vm1, %v546_v10  ;;  %521 = vmatmul.mubr.msk.bf16.gmra.mxu1 %vm221_vm1, %v550_v11 }
  0xd8   : > { %v510_v12 = vpop.f32.mrf.mxu0  ;;  %v518_v14 = vpop.f32.mrf.mxu1 }
  0xd9   : > { %v370_v23 = vmul.f32 %v510_v12, %v510_v12  ;;  %v378_v54 = vmul.f32 %v518_v14, %v518_v14 }
  0xda   : > { %v284_v13 = vpop.f32.mrf.mxu0  ;;  %v316_v16 = vpop.f32.mrf.mxu1 }
  0xdb   : > { %v368_v18 = vmul.f32 %v284_v13, %v284_v13  ;;  %v376_v47 = vmul.f32 %v316_v16, %v316_v16 }
  0xdc   : > { %v511_v15 = vpop.f32.mrf.mxu0  ;;  %v519_v22 = vpop.f32.mrf.mxu1 }
  0xdd   : > { %v371_v27 = vmul.f32 %v511_v15, %v511_v15  ;;  %v379_v57 = vmul.f32 %v519_v22, %v519_v22 }
  0xde   : > { %v287_v17 = vpop.f32.mrf.mxu0  ;;  %v319_v31 = vpop.f32.mrf.mxu1 }
  0xdf   : > { %v347_v19 = vadd.f32 %v287_v17, %v284_v13  ;;  %v369_v20 = vmul.f32 %v287_v17, %v287_v17  ;;  %v377_v51 = vmul.f32 %v319_v31, %v319_v31 }
  0xe0   : > { %v514_v21 = vpop.f32.mrf.mxu0  ;;  %v522_v39 = vpop.f32.mrf.mxu1 }
  0xe1   : > { %v348_v24 = vadd.f32 %v510_v12, %v347_v19  ;;  %v384_v25 = vadd.f32 %v369_v20, %v368_v18  ;;  %v374_v40 = vmul.f32 %v514_v21, %v514_v21  ;;  %v382_v3 = vmul.f32 %v522_v39, %v522_v39 }
  0xe2   : > { %v300_v26 = vpop.f32.mrf.mxu0  ;;  %v332_v46 = vpop.f32.mrf.mxu1 }
  0xe3   : > { %v385_v28 = vadd.f32 %v384_v25, %v370_v23  ;;  %v349_v29 = vadd.f32 %v511_v15, %v348_v24  ;;  %v372_v33 = vmul.f32 %v300_v26, %v300_v26  ;;  %v380_v62 = vmul.f32 %v332_v46, %v332_v46 }
  0xe4   : > { %v515_v30 = vpop.f32.mrf.mxu0  ;;  %v523_v53 = vpop.f32.mrf.mxu1 }
  0xe5   : > { %v350_v32 = vadd.f32 %v349_v29, %v300_v26  ;;  %v386_v34 = vadd.f32 %v385_v28, %v371_v27  ;;  %v375_v43 = vmul.f32 %v515_v30, %v515_v30  ;;  %v383_v6 = vmul.f32 %v523_v53, %v523_v53 }
  0xe6   : > { %v303_v35 = vpop.f32.mrf.mxu0  ;;  %v335_v60 = vpop.f32.mrf.mxu1 }
  0xe7   : > { %v387_v36 = vadd.f32 %v386_v34, %v372_v33  ;;  %v351_v37 = vadd.f32 %v350_v32, %v303_v35  ;;  %v373_v38 = vmul.f32 %v303_v35, %v303_v35  ;;  %v381_v2 = vmul.f32 %v335_v60, %v335_v60 }
  0xe9   : > { %v352_v41 = vadd.f32 %v514_v21, %v351_v37  ;;  %v388_v42 = vadd.f32 %v387_v36, %v373_v38 }
  0xeb   : > { %v353_v44 = vadd.f32 %v515_v30, %v352_v41  ;;  %v389_v45 = vadd.f32 %v388_v42, %v374_v40 }
  0xed   : > { %v390_v48 = vadd.f32 %v389_v45, %v375_v43  ;;  %v354_v49 = vadd.f32 %v353_v44, %v316_v16 }
  0xef   : > { %v355_v50 = vadd.f32 %v354_v49, %v319_v31  ;;  %v391_v52 = vadd.f32 %v390_v48, %v376_v47 }
  0xf1   : > { %v356_v55 = vadd.f32 %v518_v14, %v355_v50  ;;  %v392_v56 = vadd.f32 %v391_v52, %v377_v51 }
  0xf3   : > { %v393_v58 = vadd.f32 %v392_v56, %v378_v54  ;;  %v357_v59 = vadd.f32 %v519_v22, %v356_v55 }
  0xf5   : > { %v358_v61 = vadd.f32 %v357_v59, %v332_v46  ;;  %v394_v63 = vadd.f32 %v393_v58, %v379_v57 }
  0xf7   : > { %v395_v0 = vadd.f32 %v394_v63, %v380_v62  ;;  %v359_v1 = vadd.f32 %v358_v61, %v335_v60 }
  0xf9   : > { %v360_v4 = vadd.f32 %v522_v39, %v359_v1  ;;  %v396_v5 = vadd.f32 %v395_v0, %v381_v2 }
  0xfb   : > { %v361_v7 = vadd.f32 %v523_v53, %v360_v4  ;;  %v397_v8 = vadd.f32 %v396_v5, %v382_v3 }
  0xfd   : > { %v362_v9 = vrot.slane %v361_v7, 4  ;;  %v398_v10 = vadd.f32 %v397_v8, %v383_v6 }
  0xff   : > { %v363_v11 = vadd.f32 %v362_v9, %v361_v7  ;;  %v399_v12 = vrot.slane %v398_v10, 4 }
 0x101   : > { %v364_v13 = vrot.slane %v363_v11, 2  ;;  %v400_v14 = vadd.f32 %v399_v12, %v398_v10 }
 0x103   : > { %v365_v15 = vadd.f32 %v364_v13, %v363_v11  ;;  %v401_v16 = vrot.slane %v400_v14, 2 }
 0x105   : > { %v366_v17 = vrot.slane %v365_v15, 1  ;;  %v402_v18 = vadd.f32 %v401_v16, %v400_v14 }
 0x107   : > { %v403_v19 = vrot.slane %v402_v18, 1  ;;  %v367_v20 = vadd.f32 %v366_v17, %v365_v15 }
 0x109   : > { %v404_v21 = vadd.f32 %v403_v19, %v402_v18 }
 0x10b   : > { %v406_v22 = vsel %vm405_vm2, %v367_v20, %v404_v21 }
 0x10c   : > { %v407_v23 = vsel %vm246_vm0, %v406_v22, 0.0 }
 0x10d   : > { %408 = vst [vmem:[%s143_s25] sm:$0xff] %v407_v23 }
 0x10e PF: > { %s12_s9 = sadd.s32 1, %s557_s9  }
 0x10f   : > { %p9_p5 = scmp.ge.s32.totalorder %s12_s9, 6  }
 0x111   :  { %11 = sbr.rel (!%p9_p5) target bundleno = 1 (0x1), region = 58 }

</bundles_post_ra>
